<compile_context>
chip_gen: v5e
topology: v5e:2x2
jax: 0.10.0
libtpu: 0.0.40
codegen_flags: <defaults>
</compile_context>

<pallas_src>
import jax
import jax.numpy as jnp
from jax.experimental import pallas as pl
from jax.experimental.pallas import tpu as pltpu


_INV_SQRT2 = 0.7071067811865476


def _gelu_exact(x):
    # PyTorch nn.GELU() default = exact erf formulation.
    # TODO(synk): tanh-approx GELU would run on the EUP (cheaper on v6e/v7x) but
    # changes numerics vs PyTorch's exact erf GELU, so it is kept exact here.
    return 0.5 * x * (1.0 + jax.lax.erf(x * _INV_SQRT2))


def _mlp_kernel(emb_ref, xl_ref, w1a_ref, w1b_ref, b1_ref,
                w2_ref, b2_ref, w3_ref, b3_ref, o_ref):
    # Layer 1: concat([emb, x_last.repeat]) @ W1
    #        == emb @ W1[:E] + x_last @ W1[E:]   (x contribution broadcast over rows)
    xw = jnp.dot(xl_ref[...], w1b_ref[...], preferred_element_type=jnp.float32)   # (1, H)
    h = jnp.dot(emb_ref[...], w1a_ref[...], preferred_element_type=jnp.float32)   # (tile_t, H)
    h = _gelu_exact(h + xw + b1_ref[...])

    # Layer 2.
    h = h.astype(w2_ref.dtype)  # native-precision MXU operand (no-op for f32)
    h = _gelu_exact(jnp.dot(h, w2_ref[...], preferred_element_type=jnp.float32)
                    + b2_ref[...])

    # Layer 3 (no activation).
    h = h.astype(w3_ref.dtype)
    o = jnp.dot(h, w3_ref[...], preferred_element_type=jnp.float32) + b3_ref[...]
    o_ref[...] = o.astype(o_ref.dtype)


def _round_up(x, m):
    return (x + m - 1) // m * m


def _pick_t_tile(t, max_tile):
    """Balanced T tiling: tile multiple of 8, <= max_tile, pad waste < 8 rows/block."""
    t8 = _round_up(max(int(t), 1), 8)
    max_tile = _round_up(max(int(max_tile), 8), 8)
    n_blocks = -(-t8 // max_tile)
    tile = _round_up(-(-t8 // n_blocks), 8)
    return tile, tile * n_blocks


def _vmem_limit_bytes(tile_t, e, h, bn, in_itemsize, w_itemsize, out_itemsize):
    inputs = 2 * tile_t * e * in_itemsize + 2 * e * in_itemsize   # emb (2 bufs) + x_last
    weights = 2 * (2 * e * h + 2 * h + h * h + h * bn + bn) * w_itemsize
    outputs = 2 * tile_t * bn * out_itemsize
    interm = 3 * tile_t * h * 4 + tile_t * bn * 4                 # f32 hidden activations
    est = inputs + weights + outputs + interm
    return int(min(128 * 1024 * 1024, max(32 * 1024 * 1024, int(1.25 * est))))


def mlp_past_predictor_forward(x, indices, params, *, t_tile=256):
    """x: (B, Tx, n_embd) float, indices: (B, T) int. Returns (B, T, bottleneck)."""
    wpe, w1, b1, w2, b2, w3, b3 = params
    bsz, _, e = x.shape
    t = indices.shape[1]
    hdim = w2.shape[0]
    bott = w3.shape[1]
    assert w1.shape[0] == 2 * e, "W1 in_features must equal 2 * n_embd"

    # Upstream ops of MLPPastPredictor.forward:
    # TODO(synk): the wpe row-gather stays in plain JAX -- a per-row dynamic
    # gather has no clean rectangular BlockSpec expression.
    emb = jnp.take(wpe, indices, axis=0)                          # (B, T, E)
    x_last = x[:, -1:, :].astype(emb.dtype)                       # (B, 1, E) -- NOT repeated

    # Split W1 so the concat never has to be materialized in HBM.
    w1a = w1[:e]
    w1b = w1[e:]

    tile_t, t_pad = _pick_t_tile(t, t_tile)
    if t_pad != t:
        emb = jnp.pad(emb, ((0, 0), (0, t_pad - t), (0, 0)))

    grid = (bsz, t_pad // tile_t)
    out_dtype = x.dtype

    out3d = pl.pallas_call(
        _mlp_kernel,
        out_shape=jax.ShapeDtypeStruct((bsz, t_pad, bott), out_dtype),
        grid_spec=pltpu.PrefetchScalarGridSpec(
            num_scalar_prefetch=0,
            grid=grid,
            in_specs=[
                pl.BlockSpec((None, tile_t, e), lambda b, ti: (b, ti, 0)),  # wpe[indices]
                pl.BlockSpec((None, 1, e), lambda b, ti: (b, 0, 0)),        # last-step x row
                pl.BlockSpec((e, hdim), lambda b, ti: (0, 0)),              # W1[:E]  (resident)
                pl.BlockSpec((e, hdim), lambda b, ti: (0, 0)),              # W1[E:]  (resident)
                pl.BlockSpec((1, hdim), lambda b, ti: (0, 0)),              # b1
                pl.BlockSpec((hdim, hdim), lambda b, ti: (0, 0)),           # W2
                pl.BlockSpec((1, hdim), lambda b, ti: (0, 0)),              # b2
                pl.BlockSpec((hdim, bott), lambda b, ti: (0, 0)),           # W3
                pl.BlockSpec((1, bott), lambda b, ti: (0, 0)),              # b3
            ],
            out_specs=pl.BlockSpec((None, tile_t, bott), lambda b, ti: (b, ti, 0)),
        ),
        compiler_params=pltpu.CompilerParams(
            dimension_semantics=("parallel", "parallel"),
            vmem_limit_bytes=_vmem_limit_bytes(
                tile_t, e, hdim, bott,
                emb.dtype.itemsize, w1.dtype.itemsize,
                jnp.dtype(out_dtype).itemsize),
        ),
    )(emb, x_last, w1a, w1b, b1, w2, b2, w3, b3)

    return out3d[:, :t, :]


def init_params(key, n_embd, block_size, hidden_dim=2048, bottleneck_dim=256,
                dtype=jnp.float32):
    """Mirror PyTorch init: trunc_normal_(std=0.02) Linear weights, zero biases,
    N(0,1) nn.Embedding table for wpe."""
    kwpe, k1, k2, k3 = jax.random.split(key, 4)

    def trunc_w(k, shape):
        return (0.02 * jax.random.truncated_normal(k, -2.0, 2.0, shape)).astype(dtype)

    wpe = jax.random.normal(kwpe, (block_size, n_embd)).astype(dtype)
    in_dim = 2 * n_embd
    w1 = trunc_w(k1, (in_dim, hidden_dim))
    b1 = jnp.zeros((1, hidden_dim), dtype)
    w2 = trunc_w(k2, (hidden_dim, hidden_dim))
    b2 = jnp.zeros((1, hidden_dim), dtype)
    w3 = trunc_w(k3, (hidden_dim, bottleneck_dim))
    b3 = jnp.zeros((1, bottleneck_dim), dtype)
    return (wpe, w1, b1, w2, b2, w3, b3)


def mlp_past_predictor_reference(x, indices, params):
    """Pure-JAX reference of the same forward (for sanity check)."""
    wpe, w1, b1, w2, b2, w3, b3 = params
    bsz, _, e = x.shape
    t = indices.shape[1]
    fp_emb = jnp.take(wpe, indices, axis=0)
    x_rep = jnp.broadcast_to(x[:, -1:, :], (bsz, t, e))
    inp = jnp.concatenate([fp_emb, x_rep], axis=-1).reshape(bsz * t, 2 * e)
    h = _gelu_exact(inp @ w1 + b1)
    h = _gelu_exact(h @ w2 + b2)
    o = h @ w3 + b3
    return o.reshape(bsz, t, -1)


if __name__ == "__main__":
    # Small, module-consistent shapes: batch=2, x seq len=4, n_embd=128,
    # indices seq len=8, block_size=16, hidden=256, bottleneck=256
    # (Projector hard-codes the bottleneck to 256).
    B, TX, T, N_EMBD, BLOCK_SIZE, HIDDEN, BOTTLENECK = 2, 4, 8, 128, 16, 256, 256

    key = jax.random.PRNGKey(0)
    kx, ki, kp = jax.random.split(key, 3)
    x = jax.random.normal(kx, (B, TX, N_EMBD), dtype=jnp.float32)
    indices = jax.random.randint(ki, (B, T), 0, BLOCK_SIZE, dtype=jnp.int32)
    params = init_params(kp, N_EMBD, BLOCK_SIZE, HIDDEN, BOTTLENECK)

    out = mlp_past_predictor_forward(x, indices, params)
    out = jax.block_until_ready(out)

    ref = mlp_past_predictor_reference(x, indices, params)
    assert out.shape == (B, T, BOTTLENECK), out.shape
    assert jnp.allclose(out, ref, atol=1e-4, rtol=1e-4), "mismatch vs JAX reference"

    print("KERNEL_OK")
</pallas_src>

<mosaic_0001>
module attributes {stable_mosaic.version = 11 : i64} {
  func.func @_mlp_kernel(%arg0: i32, %arg1: i32, %arg2: memref<1x8x128xf32, #tpu.memory_space<vmem>>, %arg3: memref<1x1x128xf32, #tpu.memory_space<vmem>>, %arg4: memref<128x256xf32, #tpu.memory_space<vmem>>, %arg5: memref<128x256xf32, #tpu.memory_space<vmem>>, %arg6: memref<1x256xf32, #tpu.memory_space<vmem>>, %arg7: memref<256x256xf32, #tpu.memory_space<vmem>>, %arg8: memref<1x256xf32, #tpu.memory_space<vmem>>, %arg9: memref<256x256xf32, #tpu.memory_space<vmem>>, %arg10: memref<1x256xf32, #tpu.memory_space<vmem>>, %arg11: memref<1x8x256xf32, #tpu.memory_space<vmem>>) attributes {dimension_semantics = [#tpu.dimension_semantics<parallel>, #tpu.dimension_semantics<parallel>], iteration_bounds = array<i64: 2, 1>, scalar_prefetch = 0 : i64, scratch_operands = 0 : i64, tpu.core_type = #tpu.core_type<tc>, window_params = [{transform_indices = @transform_0, window_bounds = array<i64: 1, 8, 128>}, {transform_indices = @transform_1, window_bounds = array<i64: 1, 1, 128>}, {pipeline_mode = #tpu.pipeline_mode<synchronous>, transform_indices = @transform_2, window_bounds = array<i64: 128, 256>}, {pipeline_mode = #tpu.pipeline_mode<synchronous>, transform_indices = @transform_3, window_bounds = array<i64: 128, 256>}, {pipeline_mode = #tpu.pipeline_mode<synchronous>, transform_indices = @transform_4, window_bounds = array<i64: 1, 256>}, {pipeline_mode = #tpu.pipeline_mode<synchronous>, transform_indices = @transform_5, window_bounds = array<i64: 256, 256>}, {pipeline_mode = #tpu.pipeline_mode<synchronous>, transform_indices = @transform_6, window_bounds = array<i64: 1, 256>}, {pipeline_mode = #tpu.pipeline_mode<synchronous>, transform_indices = @transform_7, window_bounds = array<i64: 256, 256>}, {pipeline_mode = #tpu.pipeline_mode<synchronous>, transform_indices = @transform_8, window_bounds = array<i64: 1, 256>}, {transform_indices = @transform_9, window_bounds = array<i64: 1, 8, 256>}]} {
    %c0 = arith.constant 0 : index
    %c0_0 = arith.constant 0 : index
    %c0_1 = arith.constant 0 : index
    %0 = vector.load %arg3[%c0, %c0_0, %c0_1] : memref<1x1x128xf32, #tpu.memory_space<vmem>>, vector<1x1x128xf32>
    %1 = vector.shape_cast %0 : vector<1x1x128xf32> to vector<1x128xf32>
    %c0_2 = arith.constant 0 : index
    %c0_3 = arith.constant 0 : index
    %2 = vector.load %arg5[%c0_2, %c0_3] : memref<128x256xf32, #tpu.memory_space<vmem>>, vector<128x256xf32>
    %cst = arith.constant dense<0.000000e+00> : vector<1x256xf32>
    %3 = tpu.matmul %1, %2, %cst {dimension_numbers = #tpu.dot_dimension_numbers<[1], [0], [0], [1], [0, 0, 1, 1], [], []>} : vector<1x128xf32>, vector<128x256xf32>, vector<1x256xf32> -> vector<1x256xf32>
    %c0_4 = arith.constant 0 : index
    %c0_5 = arith.constant 0 : index
    %c0_6 = arith.constant 0 : index
    %4 = vector.load %arg2[%c0_4, %c0_5, %c0_6] : memref<1x8x128xf32, #tpu.memory_space<vmem>>, vector<1x8x128xf32>
    %5 = vector.shape_cast %4 : vector<1x8x128xf32> to vector<8x128xf32>
    %c0_7 = arith.constant 0 : index
    %c0_8 = arith.constant 0 : index
    %6 = vector.load %arg4[%c0_7, %c0_8] : memref<128x256xf32, #tpu.memory_space<vmem>>, vector<128x256xf32>
    %cst_9 = arith.constant dense<0.000000e+00> : vector<8x256xf32>
    %7 = tpu.matmul %5, %6, %cst_9 {dimension_numbers = #tpu.dot_dimension_numbers<[1], [0], [0], [1], [0, 0, 1, 1], [], []>} : vector<8x128xf32>, vector<128x256xf32>, vector<8x256xf32> -> vector<8x256xf32>
    %8 = vector.broadcast %3 : vector<1x256xf32> to vector<8x256xf32>
    %9 = arith.addf %7, %8 : vector<8x256xf32>
    %c0_10 = arith.constant 0 : index
    %c0_11 = arith.constant 0 : index
    %10 = vector.load %arg6[%c0_10, %c0_11] : memref<1x256xf32, #tpu.memory_space<vmem>>, vector<1x256xf32>
    %11 = vector.broadcast %10 : vector<1x256xf32> to vector<8x256xf32>
    %12 = arith.addf %9, %11 : vector<8x256xf32>
    %cst_12 = arith.constant 5.000000e-01 : f32
    %13 = vector.broadcast %cst_12 : f32 to vector<8x256xf32>
    %14 = arith.mulf %13, %12 : vector<8x256xf32>
    %cst_13 = arith.constant 0.707106769 : f32
    %15 = vector.broadcast %cst_13 : f32 to vector<8x256xf32>
    %16 = arith.mulf %12, %15 : vector<8x256xf32>
    %17 = math.erf %16 : vector<8x256xf32>
    %cst_14 = arith.constant 1.000000e+00 : f32
    %18 = vector.broadcast %cst_14 : f32 to vector<8x256xf32>
    %19 = arith.addf %18, %17 : vector<8x256xf32>
    %20 = arith.mulf %14, %19 : vector<8x256xf32>
    %c0_15 = arith.constant 0 : index
    %c0_16 = arith.constant 0 : index
    %21 = vector.load %arg7[%c0_15, %c0_16] : memref<256x256xf32, #tpu.memory_space<vmem>>, vector<256x256xf32>
    %cst_17 = arith.constant dense<0.000000e+00> : vector<8x256xf32>
    %22 = tpu.matmul %20, %21, %cst_17 {dimension_numbers = #tpu.dot_dimension_numbers<[1], [0], [0], [1], [0, 0, 1, 1], [], []>} : vector<8x256xf32>, vector<256x256xf32>, vector<8x256xf32> -> vector<8x256xf32>
    %c0_18 = arith.constant 0 : index
    %c0_19 = arith.constant 0 : index
    %23 = vector.load %arg8[%c0_18, %c0_19] : memref<1x256xf32, #tpu.memory_space<vmem>>, vector<1x256xf32>
    %24 = vector.broadcast %23 : vector<1x256xf32> to vector<8x256xf32>
    %25 = arith.addf %22, %24 : vector<8x256xf32>
    %cst_20 = arith.constant 5.000000e-01 : f32
    %26 = vector.broadcast %cst_20 : f32 to vector<8x256xf32>
    %27 = arith.mulf %26, %25 : vector<8x256xf32>
    %cst_21 = arith.constant 0.707106769 : f32
    %28 = vector.broadcast %cst_21 : f32 to vector<8x256xf32>
    %29 = arith.mulf %25, %28 : vector<8x256xf32>
    %30 = math.erf %29 : vector<8x256xf32>
    %cst_22 = arith.constant 1.000000e+00 : f32
    %31 = vector.broadcast %cst_22 : f32 to vector<8x256xf32>
    %32 = arith.addf %31, %30 : vector<8x256xf32>
    %33 = arith.mulf %27, %32 : vector<8x256xf32>
    %c0_23 = arith.constant 0 : index
    %c0_24 = arith.constant 0 : index
    %34 = vector.load %arg9[%c0_23, %c0_24] : memref<256x256xf32, #tpu.memory_space<vmem>>, vector<256x256xf32>
    %cst_25 = arith.constant dense<0.000000e+00> : vector<8x256xf32>
    %35 = tpu.matmul %33, %34, %cst_25 {dimension_numbers = #tpu.dot_dimension_numbers<[1], [0], [0], [1], [0, 0, 1, 1], [], []>} : vector<8x256xf32>, vector<256x256xf32>, vector<8x256xf32> -> vector<8x256xf32>
    %c0_26 = arith.constant 0 : index
    %c0_27 = arith.constant 0 : index
    %36 = vector.load %arg10[%c0_26, %c0_27] : memref<1x256xf32, #tpu.memory_space<vmem>>, vector<1x256xf32>
    %37 = vector.broadcast %36 : vector<1x256xf32> to vector<8x256xf32>
    %38 = arith.addf %35, %37 : vector<8x256xf32>
    %c0_28 = arith.constant 0 : index
    %c0_29 = arith.constant 0 : index
    %c0_30 = arith.constant 0 : index
    %39 = vector.load %arg11[%c0_28, %c0_29, %c0_30] : memref<1x8x256xf32, #tpu.memory_space<vmem>>, vector<1x8x256xf32>
    %40 = vector.shape_cast %39 : vector<1x8x256xf32> to vector<8x256xf32>
    %41 = vector.shape_cast %38 : vector<8x256xf32> to vector<1x8x256xf32>
    tpu.vector_store %arg11[%c0_28, %c0_29, %c0_30], %41 {strides = array<i32>} : memref<1x8x256xf32, #tpu.memory_space<vmem>>, vector<1x8x256xf32>,
    return
  }
  func.func @transform_0(%arg0: i32, %arg1: i32) -> (i32, i32, i32) {
    %c0_i32 = arith.constant 0 : i32
    %c0_i32_0 = arith.constant 0 : i32
    return %arg0, %arg1, %c0_i32 : i32, i32, i32
  }
  func.func @transform_1(%arg0: i32, %arg1: i32) -> (i32, i32, i32) {
    %c0_i32 = arith.constant 0 : i32
    %c0_i32_0 = arith.constant 0 : i32
    %c0_i32_1 = arith.constant 0 : i32
    return %arg0, %c0_i32, %c0_i32_0 : i32, i32, i32
  }
  func.func @transform_2(%arg0: i32, %arg1: i32) -> (i32, i32) {
    %c0_i32 = arith.constant 0 : i32
    %c0_i32_0 = arith.constant 0 : i32
    %c0_i32_1 = arith.constant 0 : i32
    return %c0_i32, %c0_i32_0 : i32, i32
  }
  func.func @transform_3(%arg0: i32, %arg1: i32) -> (i32, i32) {
    %c0_i32 = arith.constant 0 : i32
    %c0_i32_0 = arith.constant 0 : i32
    %c0_i32_1 = arith.constant 0 : i32
    return %c0_i32, %c0_i32_0 : i32, i32
  }
  func.func @transform_4(%arg0: i32, %arg1: i32) -> (i32, i32) {
    %c0_i32 = arith.constant 0 : i32
    %c0_i32_0 = arith.constant 0 : i32
    %c0_i32_1 = arith.constant 0 : i32
    return %c0_i32, %c0_i32_0 : i32, i32
  }
  func.func @transform_5(%arg0: i32, %arg1: i32) -> (i32, i32) {
    %c0_i32 = arith.constant 0 : i32
    %c0_i32_0 = arith.constant 0 : i32
    %c0_i32_1 = arith.constant 0 : i32
    return %c0_i32, %c0_i32_0 : i32, i32
  }
  func.func @transform_6(%arg0: i32, %arg1: i32) -> (i32, i32) {
    %c0_i32 = arith.constant 0 : i32
    %c0_i32_0 = arith.constant 0 : i32
    %c0_i32_1 = arith.constant 0 : i32
    return %c0_i32, %c0_i32_0 : i32, i32
  }
  func.func @transform_7(%arg0: i32, %arg1: i32) -> (i32, i32) {
    %c0_i32 = arith.constant 0 : i32
    %c0_i32_0 = arith.constant 0 : i32
    %c0_i32_1 = arith.constant 0 : i32
    return %c0_i32, %c0_i32_0 : i32, i32
  }
  func.func @transform_8(%arg0: i32, %arg1: i32) -> (i32, i32) {
    %c0_i32 = arith.constant 0 : i32
    %c0_i32_0 = arith.constant 0 : i32
    %c0_i32_1 = arith.constant 0 : i32
    return %c0_i32, %c0_i32_0 : i32, i32
  }
  func.func @transform_9(%arg0: i32, %arg1: i32) -> (i32, i32, i32) {
    %c0_i32 = arith.constant 0 : i32
    %c0_i32_0 = arith.constant 0 : i32
    return %arg0, %arg1, %c0_i32 : i32, i32, i32
  }
}

</mosaic_0001>

<bundles_post_ra>
// kernel: tpu_custom_call.1
= control target key start
LH: loop header
LB: loop body
LE: loop exit
PB: predicated region body
PF: predicated region fallthrough
CT: control target
= control target key end

     0   :  { %s2023_s0 = inlined_call_operand.hbm [shape: f32[2,8,128], index: 0, kind: input, shape index: {}]   ;;  %s2024_s1 = inlined_call_operand.hbm [shape: f32[2,1,128], index: 1, kind: input, shape index: {}]   ;;  %s2025_s2 = inlined_call_operand.hbm [shape: f32[128,256], index: 2, kind: input, shape index: {}]   ;;  %s2026_s3 = inlined_call_operand.hbm [shape: f32[128,256], index: 3, kind: input, shape index: {}]   ;;  %s2027_s4 = inlined_call_operand.vmem [shape: f32[1,256], index: 4, kind: input, shape index: {}]   ;;  %s2028_s5 = inlined_call_operand.hbm [shape: f32[256,256], index: 5, kind: input, shape index: {}]   ;;  %s2029_s6 = inlined_call_operand.vmem [shape: f32[1,256], index: 6, kind: input, shape index: {}]   ;;  %s2030_s7 = inlined_call_operand.hbm [shape: f32[256,256], index: 7, kind: input, shape index: {}]   ;;  %s2031_s8 = inlined_call_operand.vmem [shape: f32[1,256], index: 8, kind: input, shape index: {}]   ;;  %s2032_s9 = inlined_call_operand.hbm [shape: f32[2,8,256], index: 9, kind: output, shape index: {}]  }
   0x1   :  { %2039 = sst [smem:[#allocation26_spill]] %s2025_s2 }
   0x2   :  { %2040 = sst [smem:[#allocation27_spill]] %s2026_s3 }
   0x3   :  { %2041 = sst [smem:[#allocation28_spill]] %s2028_s5 }
   0x4   :  { %2042 = sst [smem:[#allocation29_spill]] %s2030_s7 }
   0x5   :  { %14 = vsyncpa [#allocation3], 0 }
   0x6   :  { %16 = vsyncpa [#allocation3 + $0x1], 0 }
   0x7   :  { %17 = vsyncpa [#allocation6], 0 }
   0x8   :  { %19 = vsyncpa [#allocation6 + $0x1], 0 }
   0x9   :  { %20 = vsyncpa [#allocation9], 0 }
   0xa   :  { %21 = vsyncpa [#allocation12], 0 }
   0xb   :  { %22 = vsyncpa [#allocation4], 0 }
   0xc   :  { %24 = vsyncpa [#allocation4 + $0x1], 0  ;;  %s1741_s30 = smov 0   ;;  %s1743_s10 = smov 0  }
   0xd   :  { %s1745_s11 = smov 0   ;;  %s1747_s12 = smov 0  }
   0xe   :  { %s1749_s13 = smov 0   ;;  %s1751_s14 = smov 0  }
   0xf LB: > { %2043 = sst [smem:[#allocation20_spill]] %s1663_s30  ;;  %s1772_s15 = sadd.s32 4294967295, %s1683_s14   ;;  %s1683_s14 = sphi %s1751_s14, %s30_s14   ;;  %s1679_s13 = sphi %s1749_s13, %s2068_s13   ;;  %s1675_s12 = sphi %s1747_s12, %s2067_s12   ;;  %s1671_s11 = sphi %s1745_s11, %s2063_s11   ;;  %s1667_s10 = sphi %s1743_s10, %s2066_s10   ;;  %s1663_s30 = sphi %s1741_s30, %s2065_s30  }
  0x10   : > { %2044 = sst [smem:[#allocation21_spill]] %s1671_s11  ;;  %p1262_p0 = scmp.ge.s32.totalorder %s1683_s14, 1 }
  0x11   : > { %p65_p1 = scmp.eq.s32.totalorder %s1772_s15, 0  ;;  %p276_p2 = scmp.lt.s32.totalorder %s1683_s14, 3 }
  0x12   : > { %s2045_s2 = sld [smem:[#allocation26_spill]]  ;;  %s1685_s20 = smov [#allocation7]  }
  0x13   : > { %p1780_p3 = pnand %p1262_p0, %p276_p2  ;;  %s289_s21 = sshll.u32 %s1685_s20, 4  ;;  %s290_s21 = int_to_ptr.vmem [resolvable:$true] %s289_s21 }
  0x14   : > { %p1267_p6 = scmp.ge.s32.totalorder %s1683_s14, 2  ;;  %s2048_s3 = sld [smem:[#allocation27_spill]] }
  0x15   : > { %p1309_p4 = pneg %p1780_p3  ;;  %s1686_s26 = smov 256  }
  0x16   : > { %s1687_s27 = smov 16   ;;  %s1688_s28 = smov [#allocation8]  }
  0x17   : > { %p1788_p5 = pnand %p1309_p4, %p65_p1  ;;  %s303_s29 = sshll.u32 %s1688_s28, 4  ;;  %s304_s29 = int_to_ptr.vmem [resolvable:$true] %s303_s29 }
  0x18   : > { %s287_s18 = sshll.u32 %s2045_s2, 4  ;;  %s2049_s5 = sld [smem:[#allocation28_spill]]  ;;  %s288_s18 = int_to_ptr.hbm [resolvable:$true] %s287_s18 }
  0x19   : > { %1312 = dma.hbm_to_vmem [thread:$0]  (!%p1788_p5), %s288_s18, 4096, %s290_s21, [#allocation6], %s1686_s26, %s1686_s26, %s1687_s27  }
  0x1a   : > { %s301_s25 = sshll.u32 %s2048_s3, 4  ;;  %s2050_s7 = sld [smem:[#allocation29_spill]]  ;;  %s302_s25 = int_to_ptr.hbm [resolvable:$true] %s301_s25 }
  0x1b   : > { %1315 = dma.hbm_to_vmem [thread:$0]  (!%p1788_p5), %s302_s25, 4096, %s304_s29, [#allocation9], %s1686_s26, %s1686_s26, %s1687_s27  }
  0x1c   : > { %s1689_s21 = smov [#allocation10]   ;;  %s1690_s28 = smov [#allocation11]  }
  0x1d   : > { %s320_s2 = sshll.u32 %s1689_s21, 4  ;;  %s337_s16 = sshll.u32 %s1690_s28, 4  ;;  %s321_s2 = int_to_ptr.vmem [resolvable:$true] %s320_s2  ;;  %s338_s16 = int_to_ptr.vmem [resolvable:$true] %s337_s16 }
  0x1e   : > { %s318_s20 = sshll.u32 %s2049_s5, 4  ;;  %s1261_s25 = sadd.s32 4294967294, %s1683_s14   ;;  %s319_s20 = int_to_ptr.hbm [resolvable:$true] %s318_s20 }
  0x1f   : > { %1318 = dma.hbm_to_vmem [thread:$0]  (!%p1788_p5), %s319_s20, 8192, %s321_s2, [#allocation9], %s1686_s26, %s1686_s26, %s1687_s27  }
  0x20   : > { %s335_s18 = sshll.u32 %s2050_s7, 4  ;;  %s42_s29 = sadd.s32 1, %s1679_s13  ;;  %s336_s18 = int_to_ptr.hbm [resolvable:$true] %s335_s18 }
  0x21   : > { %1321 = dma.hbm_to_vmem [thread:$0]  (!%p1788_p5), %s336_s18, 8192, %s338_s16, [#allocation12], %s1686_s26, %s1686_s26, %s1687_s27  }
  0x22   : > { %p44_p7 = scmp.ge.s32.totalorder %s42_s29, 2  ;;  %s51_s17 = sadd.s32 1, %s1671_s11 }
  0x23   : > { %p58_p8 = scmp.ne.s32.totalorder %s1671_s11, %s1667_s10  ;;  %p59_p9 = scmp.eq.s32.totalorder %s1683_s14, 0 }
  0x24   : > { %s2070_s29 = smov (%p44_p7, %s42_s29), 0  ;;  %p64_p11 = scmp.ne.s32.totalorder %s1667_s10, %s1663_s30 }
  0x25   : > { %2051 = sst [smem:[#allocation22_spill]] %s2070_s29  ;;  %p1818_p10 = por %p59_p9, %p58_p8 }
  0x26   : > { %s46_s22 = ssub.s32 %s1679_s13, %s2070_s29  ;;  %p263_p12 = scmp.eq.s32.totalorder %s1772_s15, 1 }
  0x27   : > { %p49_p13 = scmp.eq.s32.totalorder %s46_s22, 0  ;;  %p1829_p0 = por %p65_p1, %p64_p11 }
  0x28   : > { %p1833_p2 = por %p263_p12, %p58_p8  ;;  %p269_p4 = scmp.eq.s32.totalorder %s1261_s25, 1 }
  0x29   : > { %s1838_s20 = scalar_select %p49_p13, %s1671_s11, %s51_s17  }
  0x2a   : > { %s2054_s27 = scalar_select %p1833_p2, 1, 0 }
  0x2b   : > { %2056 = sst [smem:[#allocation24_spill]] %s1838_s20  ;;  %p1840_p5 = por %p269_p4, %p64_p11 }
  0x2c   : > { %2055 = sst [smem:[#allocation23_spill]] %s2054_s27  ;;  %p1337_p7 = scmp.lt.s32.totalorder %s1683_s14, 2 }
  0x2d   : > { %s2057_s23 = scalar_select %p1840_p5, 1, 0 }
  0x2e   : > { %s354_s24 = sand.u32 1, %s1671_s11   ;;  %s1269_s18 = sshll.u32 %s1679_s13, 3 }
  0x2f   : > { %2058 = sst [smem:[#allocation25_spill]] %s2057_s23  ;;  %s1268_s21 = sshll.u32 %s354_s24, 3 }
  0x30   : > { %s363_s22 = scalar_lea.hbm %s2023_s0, %s1269_s18  ;;  %s358_s5 = scalar_lea.vmem [#allocation2], %s1268_s21 }
  0x31   : > { %s365_s3 = sshll.u32 %s363_s22, 4  ;;  %s367_s7 = sshll.u32 %s358_s5, 4  ;;  %s366_s3 = int_to_ptr.hbm [resolvable:$true] %s365_s3  ;;  %s368_s7 = int_to_ptr.vmem [resolvable:$true] %s367_s7 }
  0x32   : > { %p1323_p8 = pnand %p1337_p7, %p1818_p10  ;;  %s374_s25 = sand.u32 1, %s1683_s14  }
  0x33   : > { %s380_s20 = scalar_lea.hbm %s2024_s1, %s1679_s13  ;;  %s355_s23 = scalar_lea.sflag [#allocation3], %s354_s24 }
  0x34   : > { %1325 = dma.hbm_to_vmem [thread:$0]  (!%p1323_p8), %s366_s3, 128, %s368_s7, %s355_s23  }
  0x35   : > { %s382_s11 = sshll.u32 %s380_s20, 4  ;;  %s377_s30 = scalar_lea.vmem [#allocation5], %s354_s24  ;;  %s383_s11 = int_to_ptr.hbm [resolvable:$true] %s382_s11 }
  0x36   : > { %s384_s27 = sshll.u32 %s377_s30, 4  ;;  %s375_s18 = scalar_lea.sflag [#allocation6], %s374_s25  ;;  %s385_s27 = int_to_ptr.vmem [resolvable:$true] %s384_s27 }
  0x37   : > { %1328 = dma.hbm_to_vmem [thread:$0]  (!%p1323_p8), %s383_s11, 16, %s385_s27, %s375_s18  }
  0x38   : > { %393 = sbr.rel (%p1780_p3) target bundleno = 615 (0x267), region = 56  ;;  %s1860_s5 = sand.u32 (!%p1780_p3), 1, %s1667_s10  }
  0x39   : > { %s1271_s29 = sshll.u32 (!%p1780_p3), %s1860_s5, 3  ;;  %s396_s2 = scalar_lea.sflag (!%p1780_p3), [#allocation3], %s1860_s5 }
  0x3a   : > { %s1864_s21 = scalar_lea.vmem (!%p1780_p3), [#allocation2], %s1271_s29 }
  0x3d   : > { %1638 = dma.done.wait (%p1829_p0), %s396_s2, 128  }
  0x3e   : > { %1640 = vsyncadd (%p1829_p0), %s396_s2, 4294967168  ;;  %s405_s3 = sand.u32 1, %s1772_s15   ;;  %s408_s30 = scalar_lea.vmem [#allocation5], %s1860_s5 }
  0x3f   : > { %s406_s7 = scalar_lea.sflag [#allocation6], %s405_s3 }
  0x40   : > { %1642 = dma.done.wait (%p1829_p0), %s406_s7, 16  }
  0x41   : > { %1644 = vsyncadd (%p1829_p0), %s406_s7, 4294967280 }
  0x42   : > { %1646 = dma.done.wait (%p65_p1), [#allocation6], 4096  }
  0x43   : > { %1648 = vsyncadd (%p65_p1), [#allocation6], 4294963200 }
  0x44   : > { %1650 = dma.done.wait (%p65_p1), [#allocation9], 12288  }
  0x45   : > { %1652 = vsyncadd (%p65_p1), [#allocation9], 4294955008 }
  0x46   : > { %1654 = dma.done.wait (%p65_p1), [#allocation12], 8192  }
  0x47   : > { %1656 = vsyncadd (%p65_p1), [#allocation12], 4294959104  ;;  %v572_v0 = vld [vmem:[#allocation7 + $0xf0] sm:$0xff]  ;;  %v573_v1 = vld [vmem:[#allocation7 + $0xf8] sm:$0xff]  ;;  %s1276_s23 = sshll.u32 %s1860_s5, 4  ;;  %s1286_s24 = sshll.u32 %s1675_s12, 4 }
  0x48   : > { %v570_v2 = vld [vmem:[#allocation7 + $0xe0] sm:$0xff]  ;;  %576 = vmatpush.msra.mxu2 %v572_v0  ;;  %596 = vmatpush.msra.mxu3 %v573_v1  ;;  %v571_v3 = vld [vmem:[#allocation7 + $0xe8] sm:$0xff]  ;;  %v499_v4 = vld [vmem:[#allocation8 + $0xf0] sm:$0xff]  ;;  %s1116_s22 = scalar_lea.hbm %s2032_s9, %s1286_s24  ;;  %s467_s17 = scalar_lea.vmem [#allocation13], %s1276_s23 }
  0x49   : > { %v500_v5 = vld [vmem:[#allocation8 + $0xf8] sm:$0xff]  ;;  %501 = vmatpush.msra.mxu0 %v499_v4  ;;  %v568_v6 = vld [vmem:[#allocation7 + $0xd0] sm:$0xff]  ;;  %v497_v8 = vld [vmem:[#allocation8 + $0xe0] sm:$0xff]  ;;  %s1118_s18 = sshll.u32 %s467_s17, 4  ;;  %s1120_s29 = sshll.u32 %s1116_s22, 4  ;;  %s1119_s18 = int_to_ptr.vmem [resolvable:$true] %s1118_s18  ;;  %s1121_s29 = int_to_ptr.hbm [resolvable:$true] %s1120_s29 }
  0x4a   : > { %521 = vmatpush.msra.mxu1 %v500_v5  ;;  %v569_v7 = vld [vmem:[#allocation7 + $0xd8] sm:$0xff]  ;;  %577 = vmatpush.msra.mxu2 %v570_v2  ;;  %v498_v9 = vld [vmem:[#allocation8 + $0xe8] sm:$0xff]  ;;  %v566_v10 = vld [vmem:[#allocation7 + $0xc0] sm:$0xff]  ;;  %s1103_s12 = scalar_lea.sflag [#allocation4], %s1860_s5  ;;  %s1599_s2 = sshra.s32 %s1121_s29, 4  ;;  %s1600_s2 = int_to_ptr.hbm [resolvable:$true] %s1599_s2 }
  0x4b   : > { %597 = vmatpush.msra.mxu3 %v571_v3  ;;  %502 = vmatpush.msra.mxu0 %v497_v8  ;;  %v567_v11 = vld [vmem:[#allocation7 + $0xc8] sm:$0xff]  ;;  %v495_v12 = vld [vmem:[#allocation8 + $0xd0] sm:$0xff]  ;;  %v496_v13 = vld [vmem:[#allocation8 + $0xd8] sm:$0xff]  ;;  %p1606_p10 = scmp.lt.s32.totalorder %s1600_s2, %s2032_s9 }
  0x4c   : > { %522 = vmatpush.msra.mxu1 %v498_v9  ;;  %578 = vmatpush.msra.mxu2 %v568_v6  ;;  %v493_v14 = vld [vmem:[#allocation8 + $0xc0] sm:$0xff]  ;;  %v494_v15 = vld [vmem:[#allocation8 + $0xc8] sm:$0xff]  ;;  %v564_v16 = vld [vmem:[#allocation7 + $0xb0] sm:$0xff] }
  0x4d   : > { %598 = vmatpush.msra.mxu3 %v569_v7  ;;  %503 = vmatpush.msra.mxu0 %v495_v12  ;;  %v565_v17 = vld [vmem:[#allocation7 + $0xb8] sm:$0xff]  ;;  %v491_v18 = vld [vmem:[#allocation8 + $0xb0] sm:$0xff]  ;;  %v562_v20 = vld [vmem:[#allocation7 + $0xa0] sm:$0xff] }
  0x4e   : > { %523 = vmatpush.msra.mxu1 %v496_v13  ;;  %579 = vmatpush.msra.mxu2 %v566_v10  ;;  %v492_v19 = vld [vmem:[#allocation8 + $0xb8] sm:$0xff]  ;;  %v563_v21 = vld [vmem:[#allocation7 + $0xa8] sm:$0xff]  ;;  %v489_v22 = vld [vmem:[#allocation8 + $0xa0] sm:$0xff] }
  0x4f   : > { %599 = vmatpush.msra.mxu3 %v567_v11  ;;  %504 = vmatpush.msra.mxu0 %v493_v14  ;;  %v490_v23 = vld [vmem:[#allocation8 + $0xa8] sm:$0xff]  ;;  %v560_v24 = vld [vmem:[#allocation7 + $0x90] sm:$0xff]  ;;  %v561_v25 = vld [vmem:[#allocation7 + $0x98] sm:$0xff] }
  0x50   : > { %524 = vmatpush.msra.mxu1 %v494_v15  ;;  %580 = vmatpush.msra.mxu2 %v564_v16  ;;  %v487_v26 = vld [vmem:[#allocation8 + $0x90] sm:$0xff]  ;;  %v488_v27 = vld [vmem:[#allocation8 + $0x98] sm:$0xff]  ;;  %v558_v28 = vld [vmem:[#allocation7 + $0x80] sm:$0xff] }
  0x51   : > { %600 = vmatpush.msra.mxu3 %v565_v17  ;;  %505 = vmatpush.msra.mxu0 %v491_v18  ;;  %v559_v29 = vld [vmem:[#allocation7 + $0x88] sm:$0xff]  ;;  %v485_v30 = vld [vmem:[#allocation8 + $0x80] sm:$0xff]  ;;  %v556_v32 = vld [vmem:[#allocation7 + $0x70] sm:$0xff] }
  0x52   : > { %525 = vmatpush.msra.mxu1 %v492_v19  ;;  %581 = vmatpush.msra.mxu2 %v562_v20  ;;  %v486_v31 = vld [vmem:[#allocation8 + $0x88] sm:$0xff]  ;;  %v557_v33 = vld [vmem:[#allocation7 + $0x78] sm:$0xff]  ;;  %v483_v34 = vld [vmem:[#allocation8 + $0x70] sm:$0xff] }
  0x53   : > { %601 = vmatpush.msra.mxu3 %v563_v21  ;;  %506 = vmatpush.msra.mxu0 %v489_v22  ;;  %v484_v35 = vld [vmem:[#allocation8 + $0x78] sm:$0xff]  ;;  %v554_v36 = vld [vmem:[#allocation7 + $0x60] sm:$0xff]  ;;  %v555_v37 = vld [vmem:[#allocation7 + $0x68] sm:$0xff] }
  0x54   : > { %526 = vmatpush.msra.mxu1 %v490_v23  ;;  %582 = vmatpush.msra.mxu2 %v560_v24  ;;  %v481_v38 = vld [vmem:[#allocation8 + $0x60] sm:$0xff]  ;;  %v482_v39 = vld [vmem:[#allocation8 + $0x68] sm:$0xff]  ;;  %v552_v40 = vld [vmem:[#allocation7 + $0x50] sm:$0xff] }
  0x55   : > { %602 = vmatpush.msra.mxu3 %v561_v25  ;;  %507 = vmatpush.msra.mxu0 %v487_v26  ;;  %v553_v41 = vld [vmem:[#allocation7 + $0x58] sm:$0xff]  ;;  %v479_v42 = vld [vmem:[#allocation8 + $0x50] sm:$0xff]  ;;  %v550_v44 = vld [vmem:[#allocation7 + $0x40] sm:$0xff] }
  0x56   : > { %527 = vmatpush.msra.mxu1 %v488_v27  ;;  %583 = vmatpush.msra.mxu2 %v558_v28  ;;  %v480_v43 = vld [vmem:[#allocation8 + $0x58] sm:$0xff]  ;;  %v551_v45 = vld [vmem:[#allocation7 + $0x48] sm:$0xff]  ;;  %v477_v46 = vld [vmem:[#allocation8 + $0x40] sm:$0xff] }
  0x57   : > { %603 = vmatpush.msra.mxu3 %v559_v29  ;;  %508 = vmatpush.msra.mxu0 %v485_v30  ;;  %v478_v47 = vld [vmem:[#allocation8 + $0x48] sm:$0xff]  ;;  %v548_v48 = vld [vmem:[#allocation7 + $0x30] sm:$0xff]  ;;  %v549_v49 = vld [vmem:[#allocation7 + $0x38] sm:$0xff] }
  0x58   : > { %528 = vmatpush.msra.mxu1 %v486_v31  ;;  %584 = vmatpush.msra.mxu2 %v556_v32  ;;  %v475_v50 = vld [vmem:[#allocation8 + $0x30] sm:$0xff]  ;;  %v476_v51 = vld [vmem:[#allocation8 + $0x38] sm:$0xff]  ;;  %v546_v52 = vld [vmem:[#allocation7 + $0x20] sm:$0xff] }
  0x59   : > { %604 = vmatpush.msra.mxu3 %v557_v33  ;;  %509 = vmatpush.msra.mxu0 %v483_v34  ;;  %v547_v53 = vld [vmem:[#allocation7 + $0x28] sm:$0xff]  ;;  %v473_v54 = vld [vmem:[#allocation8 + $0x20] sm:$0xff]  ;;  %v544_v56 = vld [vmem:[#allocation7 + $0x10] sm:$0xff] }
  0x5a   : > { %529 = vmatpush.msra.mxu1 %v484_v35  ;;  %585 = vmatpush.msra.mxu2 %v554_v36  ;;  %v474_v55 = vld [vmem:[#allocation8 + $0x28] sm:$0xff]  ;;  %v545_v57 = vld [vmem:[#allocation7 + $0x18] sm:$0xff]  ;;  %v471_v58 = vld [vmem:[#allocation8 + $0x10] sm:$0xff] }
  0x5b   : > { %605 = vmatpush.msra.mxu3 %v555_v37  ;;  %510 = vmatpush.msra.mxu0 %v481_v38  ;;  %v472_v59 = vld [vmem:[#allocation8 + $0x18] sm:$0xff]  ;;  %v542_v60 = vld [vmem:[#allocation7] sm:$0xff]  ;;  %v543_v61 = vld [vmem:[#allocation7 + $0x8] sm:$0xff] }
  0x5c   : > { %530 = vmatpush.msra.mxu1 %v482_v39  ;;  %586 = vmatpush.msra.mxu2 %v552_v40  ;;  %v541_v62 = vld [vmem:[%s1864_s21] sm:$0xff]  ;;  %v469_v63 = vld [vmem:[#allocation8] sm:$0xff]  ;;  %s1601_s21 = scalar_lea.hbm %s1600_s2, 16 }
  0x5d   : > { %606 = vmatpush.msra.mxu3 %v553_v41  ;;  %511 = vmatpush.msra.mxu0 %v479_v42  ;;  %v470_v0 = vld [vmem:[#allocation8 + $0x8] sm:$0xff]  ;;  %v742_v2 = vld [vmem:[#allocation10 + $0xf0] sm:$0xff]  ;;  %v743_v4 = vld [vmem:[#allocation10 + $0xf8] sm:$0xff]  ;;  %p1602_p1 = scmp.ne.s32.totalorder %s1600_s2, %s1601_s21 }
  0x5e   : > { %531 = vmatpush.msra.mxu1 %v480_v43  ;;  %587 = vmatpush.msra.mxu2 %v550_v44  ;;  %v468_v1 = vld [vmem:[%s408_s30] sm:$0x1]  ;;  %v774_v3 = vld [vmem:[#allocation10 + $0x1f0] sm:$0xff]  ;;  %v775_v5 = vld [vmem:[#allocation10 + $0x1f8] sm:$0xff]  ;;  %s1605_s30 = scalar_lea.hbm %s2032_s9, 32 }
  0x5f   : > { %607 = vmatpush.msra.mxu3 %v551_v45  ;;  %512 = vmatpush.msra.mxu0 %v477_v46  ;;  %v740_v6 = vld [vmem:[#allocation10 + $0xe0] sm:$0xff]  ;;  %v741_v8 = vld [vmem:[#allocation10 + $0xe8] sm:$0xff]  ;;  %v738_v13 = vld [vmem:[#allocation10 + $0xd0] sm:$0xff]  ;;  %p1603_p3 = pnand %p1602_p1, %p1833_p2  ;;  %p1607_p11 = scmp.lt.s32.totalorder %s1605_s30, %s1601_s21 }
  0x60   : > { %532 = vmatpush.msra.mxu1 %v478_v47  ;;  %588 = vmatpush.msra.mxu2 %v548_v48  ;;  %v772_v7 = vld [vmem:[#allocation10 + $0x1e0] sm:$0xff]  ;;  %v616_v9 = vld [vmem:[%s2027_s4] sm:$0x3]  ;;  %v770_v14 = vld [vmem:[#allocation10 + $0x1d0] sm:$0xff] }
  0x61   : > { %608 = vmatpush.msra.mxu3 %v549_v49  ;;  %513 = vmatpush.msra.mxu0 %v475_v50  ;;  %v773_v10 = vld [vmem:[#allocation10 + $0x1e8] sm:$0xff]  ;;  %v739_v15 = vld [vmem:[#allocation10 + $0xd8] sm:$0xff]  ;;  %v736_v19 = vld [vmem:[#allocation10 + $0xc0] sm:$0xff]  ;;  %v618_v22 = vperm.slane %v616_v9, 0  ;;  %v619_v23 = vperm.slane %v616_v9, 1  ;;  %p1604_p9 = pneg %p1603_p3  ;;  %p1608_p12 = por %p1607_p11, %p1606_p10 }
  0x62   : > { %533 = vmatpush.msra.mxu1 %v476_v51  ;;  %589 = vmatpush.msra.mxu2 %v546_v52  ;;  %v771_v18 = vld [vmem:[#allocation10 + $0x1d8] sm:$0xff]  ;;  %v768_v20 = vld [vmem:[#allocation10 + $0x1c0] sm:$0xff]  ;;  %v737_v21 = vld [vmem:[#allocation10 + $0xc8] sm:$0xff] }
  0x63   : > { %609 = vmatpush.msra.mxu3 %v547_v53  ;;  %514 = vmatpush.msra.mxu0 %v473_v54  ;;  %v769_v24 = vld [vmem:[#allocation10 + $0x1c8] sm:$0xff]  ;;  %v734_v25 = vld [vmem:[#allocation10 + $0xb0] sm:$0xff]  ;;  %v735_v29 = vld [vmem:[#allocation10 + $0xb8] sm:$0xff]  ;;  %p1609_p13 = pnand %p1608_p12, %p1604_p9 }
  0x64   : > { %534 = vmatpush.msra.mxu1 %v474_v55  ;;  %590 = vmatpush.msra.mxu2 %v544_v56  ;;  %v766_v26 = vld [vmem:[#allocation10 + $0x1b0] sm:$0xff]  ;;  %v767_v30 = vld [vmem:[#allocation10 + $0x1b8] sm:$0xff]  ;;  %v732_v31 = vld [vmem:[#allocation10 + $0xa0] sm:$0xff] }
  0x65   : > { %610 = vmatpush.msra.mxu3 %v545_v57  ;;  %515 = vmatpush.msra.mxu0 %v471_v58  ;;  %v764_v34 = vld [vmem:[#allocation10 + $0x1a0] sm:$0xff]  ;;  %v733_v35 = vld [vmem:[#allocation10 + $0xa8] sm:$0xff]  ;;  %v730_v37 = vld [vmem:[#allocation10 + $0x90] sm:$0xff] }
  0x66   : > { %535 = vmatpush.msra.mxu1 %v472_v59  ;;  %591 = vmatpush.msra.mxu2 %v542_v60  ;;  %v765_v36 = vld [vmem:[#allocation10 + $0x1a8] sm:$0xff]  ;;  %v762_v38 = vld [vmem:[#allocation10 + $0x190] sm:$0xff]  ;;  %v731_v41 = vld [vmem:[#allocation10 + $0x98] sm:$0xff] }
  0x67   : > { %611 = vmatpush.msra.mxu3 %v543_v61  ;;  %592 = vmatmul.f32.vlgmr.msra.gmra.mxu2 %v541_v62  ;;  %v763_v42 = vld [vmem:[#allocation10 + $0x198] sm:$0xff]  ;;  %v728_v43 = vld [vmem:[#allocation10 + $0x80] sm:$0xff]  ;;  %v729_v47 = vld [vmem:[#allocation10 + $0x88] sm:$0xff] }
  0x68   : > { %612 = vmatmul.f32.vlgmr.msra.gmra.mxu3 %v541_v62  ;;  %516 = vmatpush.msra.mxu0 %v469_v63  ;;  %v760_v44 = vld [vmem:[#allocation10 + $0x180] sm:$0xff]  ;;  %v761_v48 = vld [vmem:[#allocation10 + $0x188] sm:$0xff]  ;;  %v726_v49 = vld [vmem:[#allocation10 + $0x70] sm:$0xff] }
  0x69   : > { %536 = vmatpush.msra.mxu1 %v470_v0  ;;  %517 = vmatmul.f32.vlgmr.msra.gmra.mxu0 %v468_v1  ;;  %v758_v50 = vld [vmem:[#allocation10 + $0x170] sm:$0xff]  ;;  %v727_v53 = vld [vmem:[#allocation10 + $0x78] sm:$0xff]  ;;  %v724_v55 = vld [vmem:[#allocation10 + $0x60] sm:$0xff] }
  0x6a   : > { %537 = vmatmul.f32.vlgmr.msra.gmra.mxu1 %v468_v1  ;;  %782 = vmatpush.msrb.mxu0 %v742_v2  ;;  %v759_v54 = vld [vmem:[#allocation10 + $0x178] sm:$0xff]  ;;  %v756_v56 = vld [vmem:[#allocation10 + $0x160] sm:$0xff]  ;;  %v725_v59 = vld [vmem:[#allocation10 + $0x68] sm:$0xff] }
  0x6b   : > { %802 = vmatpush.msrb.mxu1 %v774_v3  ;;  %822 = vmatpush.msrb.mxu2 %v743_v4  ;;  %v757_v60 = vld [vmem:[#allocation10 + $0x168] sm:$0xff]  ;;  %v722_v61 = vld [vmem:[#allocation10 + $0x50] sm:$0xff]  ;;  %v723_v1 = vld [vmem:[#allocation10 + $0x58] sm:$0xff] }
  0x6c   : > { %842 = vmatpush.msrb.mxu3 %v775_v5  ;;  %783 = vmatpush.msrb.mxu0 %v740_v6  ;;  %v754_v62 = vld [vmem:[#allocation10 + $0x150] sm:$0xff]  ;;  %v755_v2 = vld [vmem:[#allocation10 + $0x158] sm:$0xff]  ;;  %v720_v3 = vld [vmem:[#allocation10 + $0x40] sm:$0xff] }
  0x6d   : > { %803 = vmatpush.msrb.mxu1 %v772_v7  ;;  %823 = vmatpush.msrb.mxu2 %v741_v8  ;;  %v752_v4 = vld [vmem:[#allocation10 + $0x140] sm:$0xff]  ;;  %v721_v8 = vld [vmem:[#allocation10 + $0x48] sm:$0xff] }
  0x6e   : > { %843 = vmatpush.msrb.mxu3 %v773_v10  ;;  %784 = vmatpush.msrb.mxu0 %v738_v13  ;;  %v753_v9 = vld [vmem:[#allocation10 + $0x148] sm:$0xff]  ;;  %v718_v10 = vld [vmem:[#allocation10 + $0x30] sm:$0xff] }
  0x6f   : > { %804 = vmatpush.msrb.mxu1 %v770_v14  ;;  %824 = vmatpush.msrb.mxu2 %v739_v15  ;;  %v719_v14 = vld [vmem:[#allocation10 + $0x38] sm:$0xff] }
  0x70   : > { %844 = vmatpush.msrb.mxu3 %v771_v18  ;;  %785 = vmatpush.msrb.mxu0 %v736_v19  ;;  %v751_v15 = vld [vmem:[#allocation10 + $0x138] sm:$0xff]  ;;  %v748_v18 = vld [vmem:[#allocation10 + $0x120] sm:$0xff] }
  0x71   : > { %805 = vmatpush.msrb.mxu1 %v768_v20  ;;  %825 = vmatpush.msrb.mxu2 %v737_v21  ;;  %v717_v21 = vld [vmem:[#allocation10 + $0x28] sm:$0xff] }
  0x72   : > { %845 = vmatpush.msrb.mxu3 %v769_v24  ;;  %786 = vmatpush.msrb.mxu0 %v734_v25  ;;  %v714_v24 = vld [vmem:[#allocation10 + $0x10] sm:$0xff] }
  0x73   : > { %806 = vmatpush.msrb.mxu1 %v766_v26  ;;  %826 = vmatpush.msrb.mxu2 %v735_v29  ;;  %v746_v25 = vld [vmem:[#allocation10 + $0x110] sm:$0xff]  ;;  %v747_v29 = vld [vmem:[#allocation10 + $0x118] sm:$0xff] }
  0x74   : > { %846 = vmatpush.msrb.mxu3 %v767_v30  ;;  %787 = vmatpush.msrb.mxu0 %v732_v31  ;;  %v712_v31 = vld [vmem:[#allocation10] sm:$0xff] }
  0x75   : > { %807 = vmatpush.msrb.mxu1 %v764_v34  ;;  %827 = vmatpush.msrb.mxu2 %v733_v35  ;;  %v713_v35 = vld [vmem:[#allocation10 + $0x8] sm:$0xff] }
  0x76   : > { %847 = vmatpush.msrb.mxu3 %v765_v36  ;;  %788 = vmatpush.msrb.mxu0 %v730_v37  ;;  %v745_v36 = vld [vmem:[#allocation10 + $0x108] sm:$0xff] }
  0x77   : > { %808 = vmatpush.msrb.mxu1 %v762_v38  ;;  %828 = vmatpush.msrb.mxu2 %v731_v41 }
  0x78   : > { %848 = vmatpush.msrb.mxu3 %v763_v42  ;;  %789 = vmatpush.msrb.mxu0 %v728_v43 }
  0x79   : > { %809 = vmatpush.msrb.mxu1 %v760_v44  ;;  %829 = vmatpush.msrb.mxu2 %v729_v47 }
  0x7a   : > { %849 = vmatpush.msrb.mxu3 %v761_v48  ;;  %790 = vmatpush.msrb.mxu0 %v726_v49 }
  0x7b   : > { %810 = vmatpush.msrb.mxu1 %v758_v50  ;;  %830 = vmatpush.msrb.mxu2 %v727_v53 }
  0x7c   : > { %850 = vmatpush.msrb.mxu3 %v759_v54  ;;  %791 = vmatpush.msrb.mxu0 %v724_v55 }
  0x7d   : > { %811 = vmatpush.msrb.mxu1 %v756_v56  ;;  %831 = vmatpush.msrb.mxu2 %v725_v59 }
  0x7e   : > { %851 = vmatpush.msrb.mxu3 %v757_v60  ;;  %792 = vmatpush.msrb.mxu0 %v722_v61 }
  0x7f   : > { %812 = vmatpush.msrb.mxu1 %v754_v62  ;;  %832 = vmatpush.msrb.mxu2 %v723_v1 }
  0x80   : > { %852 = vmatpush.msrb.mxu3 %v755_v2  ;;  %793 = vmatpush.msrb.mxu0 %v720_v3 }
  0x81   : > { %813 = vmatpush.msrb.mxu1 %v752_v4  ;;  %833 = vmatpush.msrb.mxu2 %v721_v8 }
  0x82   : > { %853 = vmatpush.msrb.mxu3 %v753_v9  ;;  %794 = vmatpush.msrb.mxu0 %v718_v10 }
  0x83   : > { %834 = vmatpush.msrb.mxu2 %v719_v14 }
  0x84   : > { %854 = vmatpush.msrb.mxu3 %v751_v15 }
  0x85   : > { %835 = vmatpush.msrb.mxu2 %v717_v21 }
  0xe6   : > { %v518_v11 = vpop.f32.mrf.mxu0 }
  0xe7   : > { %v538_v12 = vpop.f32.mrf.mxu1  ;;  %v574_v16 = vperm.slane %v518_v11, 0  ;;  %v750_v11 = vld [vmem:[#allocation10 + $0x130] sm:$0xff] }
  0xe8   : > { %v575_v17 = vperm.slane %v538_v12, 0  ;;  %814 = vmatpush.msrb.mxu1 %v750_v11 }
  0xea   : > { %v593_v27 = vpop.f32.mrf.mxu2  ;;  %815 = vmatpush.msrb.mxu1 %v748_v18 }
  0xeb   : > { %v613_v28 = vpop.f32.mrf.mxu3  ;;  %v594_v32 = vadd.f32 %v593_v27, %v574_v16 }
  0xec   : > { %v614_v33 = vadd.f32 %v613_v28, %v575_v17  ;;  %v716_v17 = vld [vmem:[#allocation10 + $0x20] sm:$0xff]  ;;  %v715_v28 = vld [vmem:[#allocation10 + $0x18] sm:$0xff]  ;;  %816 = vmatpush.msrb.mxu1 %v746_v25 }
  0xed   : > { %v1894_v39 = vadd.f32 %v618_v22, %v594_v32  ;;  %v749_v22 = vld [vmem:[#allocation10 + $0x128] sm:$0xff]  ;;  %795 = vmatpush.msrb.mxu0 %v716_v17  ;;  %v744_v32 = vld [vmem:[#allocation10 + $0x100] sm:$0xff]  ;;  %836 = vmatpush.msrb.mxu2 %v715_v28 }
  0xee   : > { %v1896_v40 = vadd.f32 %v619_v23, %v614_v33  ;;  %855 = vmatpush.msrb.mxu3 %v749_v22  ;;  %817 = vmatpush.msrb.mxu1 %v744_v32  ;;  %v980_v32 = vld [vmem:[#allocation11 + $0xf0] sm:$0xff] }
  0xef   : > { %v1899_v45 = vmul.f32 0.70710677, %v1894_v39  ;;  %796 = vmatpush.msrb.mxu0 %v714_v24  ;;  %837 = vmatpush.msrb.mxu2 %v713_v35  ;;  %v979_v35 = vld [vmem:[#allocation11 + $0xe8] sm:$0xff] }
  0xf0   : > { %v1902_v46 = vmul.f32 0.70710677, %v1896_v40  ;;  %856 = vmatpush.msrb.mxu3 %v747_v29  ;;  %v625_v29 = vmul.f32 0.5, %v1896_v40  ;;  %v976_v40 = vld [vmem:[#allocation11 + $0xd0] sm:$0xff] }
  0xf1   : > { %v628_v51 = vmul.f32 %v1899_v45, %v1899_v45  ;;  %797 = vmatpush.msrb.mxu0 %v712_v31 }
  0xf2   : > { %v668_v52 = vmul.f32 %v1902_v46, %v1902_v46  ;;  %857 = vmatpush.msrb.mxu3 %v745_v36  ;;  %v977_v36 = vld [vmem:[#allocation11 + $0xd8] sm:$0xff] }
  0xf3   : > { %v1908_v57 = vmin.f32 %v628_v51, 16.0  ;;  %1020 = vmatpush.msra.mxu0 %v980_v32 }
  0xf4   : > { %v1910_v58 = vmin.f32 %v668_v52, 16.0 }
  0xf5   : > { %v630_v63 = vmul.f32 2.1237322e-06, %v1908_v57  ;;  %v641_v5 = vmul.f32 3.8918573e-05, %v1908_v57 }
  0xf6   : > { %v670_v0 = vmul.f32 2.1237322e-06, %v1910_v58  ;;  %v681_v16 = vmul.f32 3.8918573e-05, %v1910_v58 }
  0xf7   : > { %v631_v6 = vadd.f32 0.00028619796, %v630_v63  ;;  %v642_v12 = vadd.f32 0.001143296, %v641_v5 }
  0xf8   : > { %v671_v7 = vadd.f32 0.00028619796, %v670_v0  ;;  %v682_v23 = vadd.f32 0.001143296, %v681_v16 }
  0xf9   : > { %v632_v13 = vmul.f32 %v631_v6, %v1908_v57  ;;  %v643_v19 = vmul.f32 %v642_v12, %v1908_v57 }
  0xfa   : > { %v672_v20 = vmul.f32 %v671_v7, %v1910_v58  ;;  %v683_v30 = vmul.f32 %v682_v23, %v1910_v58 }
  0xfb   : > { %v644_v26 = vadd.f32 0.014752088, %v643_v19  ;;  %v633_v27 = vadd.f32 0.0036580483, %v632_v13 }
  0xfc   : > { %v673_v34 = vadd.f32 0.0036580483, %v672_v20  ;;  %v684_v37 = vadd.f32 0.014752088, %v683_v30 }
  0xfd   : > { %v645_v33 = vmul.f32 %v644_v26, %v1908_v57  ;;  %v634_v41 = vmul.f32 %v633_v27, %v1908_v57  ;;  %v624_v26 = vmul.f32 0.5, %v1894_v39 }
  0xfe   : > { %v685_v42 = vmul.f32 %v684_v37, %v1910_v58  ;;  %v674_v44 = vmul.f32 %v673_v34, %v1910_v58  ;;  %v978_v34 = vld [vmem:[#allocation11 + $0xe0] sm:$0xff] }
  0xff   : > { %v646_v38 = vadd.f32 0.112945676, %v645_v33  ;;  %v635_v49 = vadd.f32 0.05243302, %v634_v41  ;;  %v981_v33 = vld [vmem:[#allocation11 + $0xf8] sm:$0xff]  ;;  %1021 = vmatpush.msra.mxu0 %v978_v34  ;;  %v974_v41 = vld [vmem:[#allocation11 + $0xc0] sm:$0xff] }
 0x100   : > { %v686_v47 = vadd.f32 0.112945676, %v685_v42  ;;  %v675_v52 = vadd.f32 0.05243302, %v674_v44  ;;  %1060 = vmatpush.msra.mxu2 %v981_v33  ;;  %v1012_v42 = vld [vmem:[#allocation11 + $0x1f0] sm:$0xff]  ;;  %v1013_v44 = vld [vmem:[#allocation11 + $0x1f8] sm:$0xff] }
 0x101   : > { %v647_v43 = vmul.f32 %v646_v38, %v1908_v57  ;;  %v636_v55 = vmul.f32 %v635_v49, %v1908_v57  ;;  %1022 = vmatpush.msra.mxu0 %v976_v40  ;;  %1040 = vmatpush.msra.mxu1 %v1012_v42  ;;  %v972_v49 = vld [vmem:[#allocation11 + $0xb0] sm:$0xff]  ;;  %v997_v33 = vld [vmem:[#allocation11 + $0x178] sm:$0xff]  ;;  %v994_v40 = vld [vmem:[#allocation11 + $0x160] sm:$0xff] }
 0x102   : > { %v687_v50 = vmul.f32 %v686_v47, %v1910_v58  ;;  %v676_v59 = vmul.f32 %v675_v52, %v1910_v58  ;;  %1061 = vmatpush.msra.mxu2 %v979_v35  ;;  %1080 = vmatpush.msra.mxu3 %v1013_v44  ;;  %v956_v35 = vld [vmem:[#allocation11 + $0x30] sm:$0xff] }
 0x103   : > { %v648_v48 = vadd.f32 0.4994258, %v647_v43  ;;  %v637_v61 = vadd.f32 0.18741608, %v636_v55  ;;  %v975_v43 = vld [vmem:[#allocation11 + $0xc8] sm:$0xff]  ;;  %1023 = vmatpush.msra.mxu0 %v974_v41  ;;  %v1008_v55 = vld [vmem:[#allocation11 + $0x1d0] sm:$0xff] }
 0x104   : > { %v688_v53 = vadd.f32 0.4994258, %v687_v50  ;;  %v677_v62 = vadd.f32 0.18741608, %v676_v59  ;;  %1062 = vmatpush.msra.mxu2 %v977_v36  ;;  %v1010_v50 = vld [vmem:[#allocation11 + $0x1e0] sm:$0xff]  ;;  %v992_v44 = vld [vmem:[#allocation11 + $0x150] sm:$0xff] }
 0x105   : > { %v649_v51 = vmul.f32 %v648_v48, %v1908_v57  ;;  %v638_v0 = vmul.f32 %v637_v61, %v1908_v57  ;;  %1024 = vmatpush.msra.mxu0 %v972_v49  ;;  %1041 = vmatpush.msra.mxu1 %v1010_v50  ;;  %v1009_v61 = vld [vmem:[#allocation11 + $0x1d8] sm:$0xff] }
 0x106   : > { %v689_v56 = vmul.f32 %v688_v53, %v1910_v58  ;;  %v678_v3 = vmul.f32 %v677_v62, %v1910_v58  ;;  %1063 = vmatpush.msra.mxu2 %v975_v43  ;;  %v1011_v53 = vld [vmem:[#allocation11 + $0x1e8] sm:$0xff]  ;;  %v954_v43 = vld [vmem:[#allocation11 + $0x20] sm:$0xff]  ;;  %v993_v49 = vld [vmem:[#allocation11 + $0x158] sm:$0xff] }
 0x107   : > { %v650_v54 = vadd.f32 1.0, %v649_v51  ;;  %v639_v7 = vadd.f32 1.1283791, %v638_v0  ;;  %v973_v51 = vld [vmem:[#allocation11 + $0xb8] sm:$0xff]  ;;  %1081 = vmatpush.msra.mxu3 %v1011_v53  ;;  %1042 = vmatpush.msra.mxu1 %v1008_v55  ;;  %v1006_v0 = vld [vmem:[#allocation11 + $0x1c0] sm:$0xff] }
 0x108   : > { %v690_v60 = vadd.f32 1.0, %v689_v56  ;;  %v679_v11 = vadd.f32 1.1283791, %v678_v3  ;;  %1064 = vmatpush.msra.mxu2 %v973_v51  ;;  %v971_v56 = vld [vmem:[#allocation11 + $0xa8] sm:$0xff]  ;;  %v990_v55 = vld [vmem:[#allocation11 + $0x140] sm:$0xff] }
 0x109   : > { %1397 = vrcp.f32 %v650_v54  ;;  %v662_v5 = vand.u32 2147483648, %v650_v54  ;;  %v660_v9 = vand.u32 2147483647, %v650_v54  ;;  %vm656_vm1 = vweird.f32 %v650_v54  ;;  %1082 = vmatpush.msra.mxu3 %v1009_v61  ;;  %1043 = vmatpush.msra.mxu1 %v1006_v0  ;;  %v1007_v3 = vld [vmem:[#allocation11 + $0x1c8] sm:$0xff]  ;;  %v988_v0 = vld [vmem:[#allocation11 + $0x130] sm:$0xff] }
 0x10a   : > { %1399 = vrcp.f32 %v690_v60  ;;  %v702_v13 = vand.u32 2147483648, %v690_v60  ;;  %v700_v57 = vand.u32 2147483647, %v690_v60  ;;  %v640_v16 = vmul.f32 %v639_v7, %v1899_v45  ;;  %1065 = vmatpush.msra.mxu2 %v971_v56  ;;  %v967_v7 = vld [vmem:[#allocation11 + $0x88] sm:$0xff]  ;;  %v953_v56 = vld [vmem:[#allocation11 + $0x18] sm:$0xff] }
 0x10b   : > { %v663_v14 = vor.u32 1.1754944e-38, %v662_v5  ;;  %vm661_vm4 = vcmp.eq.f32.partialorder %v660_v9, 8.507059e+37  ;;  %vm696_vm5 = vweird.f32 %v690_v60  ;;  %v680_v21 = vmul.f32 %v679_v11, %v1902_v46  ;;  %v776_v46 = vld [vmem:[%s2029_s6] sm:$0x3]  ;;  %1083 = vmatpush.msra.mxu3 %v1007_v3  ;;  %v966_v5 = vld [vmem:[#allocation11 + $0x80] sm:$0xff]  ;;  %v964_v11 = vld [vmem:[#allocation11 + $0x70] sm:$0xff] }
 0x10c   : > { %v703_v20 = vor.u32 1.1754944e-38, %v702_v13  ;;  %vm701_vm7 = vcmp.eq.f32.partialorder %v700_v57, 8.507059e+37  ;;  %v778_v39 = vperm.slane %v776_v46, 0  ;;  %v779_v48 = vperm.slane %v776_v46, 1  ;;  %v965_v13 = vld [vmem:[#allocation11 + $0x78] sm:$0xff]  ;;  %v1003_v57 = vld [vmem:[#allocation11 + $0x1a8] sm:$0xff] }
 0x10d   : > { %v991_v61 = vld [vmem:[#allocation11 + $0x148] sm:$0xff] }
 0x10e   : > { %v951_v3 = vld [vmem:[#allocation11 + $0x8] sm:$0xff] }
 0x10f   : > { %v1398_v63 = vpop.eup %1397 }
 0x110   : > { %v652_v1 = vmul.f32 %v1398_v63, %v650_v54  ;;  %v1400_v2 = vpop.eup %1399  ;;  %vm657_vm0 = vweird.f32 %v1398_v63  ;;  %v970_v54 = vld [vmem:[#allocation11 + $0xa0] sm:$0xff] }
 0x111   : > { %v692_v6 = vmul.f32 %v1400_v2, %v690_v60  ;;  %vm658_vm2 = vmor %vm656_vm1, %vm657_vm0  ;;  %vm697_vm3 = vweird.f32 %v1400_v2  ;;  %1025 = vmatpush.msra.mxu0 %v970_v54  ;;  %v952_v54 = vld [vmem:[#allocation11 + $0x10] sm:$0xff] }
 0x112   : > { %v653_v4 = vsub.f32 1.0, %v652_v1  ;;  %vm698_vm6 = vmor %vm696_vm5, %vm697_vm3  ;;  %v969_v1 = vld [vmem:[#allocation11 + $0x98] sm:$0xff] }
 0x113   : > { %v693_v10 = vsub.f32 1.0, %v692_v6  ;;  %1066 = vmatpush.msra.mxu2 %v969_v1  ;;  %v1004_v6 = vld [vmem:[#allocation11 + $0x1b0] sm:$0xff] }
 0x114   : > { %v654_v8 = vmul.f32 %v1398_v63, %v653_v4  ;;  %1044 = vmatpush.msra.mxu1 %v1004_v6 }
 0x115   : > { %v694_v15 = vmul.f32 %v1400_v2, %v693_v10  ;;  %v1005_v10 = vld [vmem:[#allocation11 + $0x1b8] sm:$0xff]  ;;  %1067 = vmatpush.msra.mxu2 %v967_v7  ;;  %v986_v7 = vld [vmem:[#allocation11 + $0x120] sm:$0xff] }
 0x116   : > { %v655_v12 = vadd.f32 %v1398_v63, %v654_v8  ;;  %1084 = vmatpush.msra.mxu3 %v1005_v10  ;;  %v987_v10 = vld [vmem:[#allocation11 + $0x128] sm:$0xff] }
 0x117   : > { %v695_v18 = vadd.f32 %v1400_v2, %v694_v15  ;;  %1068 = vmatpush.msra.mxu2 %v965_v13  ;;  %v984_v13 = vld [vmem:[#allocation11 + $0x110] sm:$0xff] }
 0x118   : > { %v659_v58 = vsel %vm658_vm2, %v1398_v63, %v655_v12  ;;  %v968_v63 = vld [vmem:[#allocation11 + $0x90] sm:$0xff]  ;;  %v1002_v12 = vld [vmem:[#allocation11 + $0x1a0] sm:$0xff]  ;;  %1085 = vmatpush.msra.mxu3 %v1003_v57 }
 0x119   : > { %v664_v17 = vsel %vm661_vm4, %v663_v14, %v659_v58  ;;  %v699_v22 = vsel %vm698_vm6, %v1400_v2, %v695_v18  ;;  %1026 = vmatpush.msra.mxu0 %v968_v63  ;;  %1045 = vmatpush.msra.mxu1 %v1002_v12  ;;  %v962_v58 = vld [vmem:[#allocation11 + $0x60] sm:$0xff]  ;;  %v963_v18 = vld [vmem:[#allocation11 + $0x68] sm:$0xff] }
 0x11a   : > { %v665_v19 = vmul.f32 %v664_v17, %v640_v16  ;;  %v704_v24 = vsel %vm701_vm7, %v703_v20, %v699_v22  ;;  %v1000_v17 = vld [vmem:[#allocation11 + $0x190] sm:$0xff]  ;;  %1069 = vmatpush.msra.mxu2 %v963_v18  ;;  %v950_v63 = vld [vmem:[#allocation11] sm:$0xff] }
 0x11b   : > { %v705_v25 = vmul.f32 %v704_v24, %v680_v21  ;;  %1027 = vmatpush.msra.mxu0 %v966_v5  ;;  %1046 = vmatpush.msra.mxu1 %v1000_v17  ;;  %v1001_v21 = vld [vmem:[#allocation11 + $0x198] sm:$0xff]  ;;  %v998_v24 = vld [vmem:[#allocation11 + $0x180] sm:$0xff]  ;;  %v983_v17 = vld [vmem:[#allocation11 + $0x108] sm:$0xff] }
 0x11c   : > { %v1277_v23 = vclamps-f32 %v665_v19, 1.0  ;;  %1086 = vmatpush.msra.mxu3 %v1001_v21 }
 0x11d   : > { %v1278_v28 = vclamps-f32 %v705_v25, 1.0  ;;  %1028 = vmatpush.msra.mxu0 %v964_v11  ;;  %v961_v25 = vld [vmem:[#allocation11 + $0x58] sm:$0xff]  ;;  %1047 = vmatpush.msra.mxu1 %v998_v24 }
 0x11e   : > { %v708_v27 = vadd.f32 1.0, %v1277_v23  ;;  %v960_v23 = vld [vmem:[#allocation11 + $0x50] sm:$0xff]  ;;  %1070 = vmatpush.msra.mxu2 %v961_v25 }
 0x11f   : > { %v709_v30 = vadd.f32 1.0, %v1278_v28  ;;  %1029 = vmatpush.msra.mxu0 %v962_v58  ;;  %v999_v28 = vld [vmem:[#allocation11 + $0x188] sm:$0xff]  ;;  %v982_v58 = vld [vmem:[#allocation11 + $0x100] sm:$0xff] }
 0x120   : > { %v710_v45 = vmul.f32 %v708_v27, %v624_v26  ;;  %1087 = vmatpush.msra.mxu3 %v999_v28 }
 0x121   : > { %v711_v31 = vmul.f32 %v709_v30, %v625_v29  ;;  %1030 = vmatpush.msra.mxu0 %v960_v23  ;;  %v958_v29 = vld [vmem:[#allocation11 + $0x40] sm:$0xff]  ;;  %v996_v30 = vld [vmem:[#allocation11 + $0x170] sm:$0xff] }
 0x122   : > { %798 = vmatmul.f32.vlgmr.msrb.gmra.mxu0 %v710_v45  ;;  %838 = vmatmul.f32.vlgmr.msrb.gmra.mxu2 %v710_v45 }
 0x123   : > { %818 = vmatmul.f32.vlgmr.msrb.gmra.mxu1 %v711_v31  ;;  %858 = vmatmul.f32.vlgmr.msrb.gmra.mxu3 %v711_v31  ;;  %v959_v31 = vld [vmem:[#allocation11 + $0x48] sm:$0xff] }
 0x124   : > { %1031 = vmatpush.msra.mxu0 %v958_v29  ;;  %1048 = vmatpush.msra.mxu1 %v996_v30 }
 0x125   : > { %1071 = vmatpush.msra.mxu2 %v959_v31  ;;  %1088 = vmatpush.msra.mxu3 %v997_v33 }
 0x126   : > { %1032 = vmatpush.msra.mxu0 %v956_v35  ;;  %1049 = vmatpush.msra.mxu1 %v994_v40 }
 0x128   : > { %1033 = vmatpush.msra.mxu0 %v954_v43  ;;  %1050 = vmatpush.msra.mxu1 %v992_v44 }
 0x12a   : > { %1034 = vmatpush.msra.mxu0 %v952_v54  ;;  %1051 = vmatpush.msra.mxu1 %v990_v55 }
 0x12c   : > { %1035 = vmatpush.msra.mxu0 %v950_v63  ;;  %1052 = vmatpush.msra.mxu1 %v988_v0 }
 0x12e   : > { %1053 = vmatpush.msra.mxu1 %v986_v7 }
 0x130   : > { %1054 = vmatpush.msra.mxu1 %v984_v13 }
 0x132   : > { %1055 = vmatpush.msra.mxu1 %v982_v58 }
 0x19f   : > { %v799_v37 = vpop.f32.mrf.mxu0 }
 0x1a0   : > { %v800_v38 = vadd.f32 %v799_v37, %v778_v39  ;;  %v819_v47 = vpop.f32.mrf.mxu1  ;;  %v957_v37 = vld [vmem:[#allocation11 + $0x38] sm:$0xff] }
 0x1a1   : > { %1072 = vmatpush.msra.mxu2 %v957_v37 }
 0x1a2   : > { %v1939_v52 = vadd.f32 %v819_v47, %v800_v38  ;;  %v995_v38 = vld [vmem:[#allocation11 + $0x168] sm:$0xff] }
 0x1a3   : > { %1089 = vmatpush.msra.mxu3 %v995_v38 }
 0x1a4   : > { %v1942_v59 = vmul.f32 0.70710677, %v1939_v52 }
 0x1a5   : > { %v839_v60 = vpop.f32.mrf.mxu2  ;;  %1090 = vmatpush.msra.mxu3 %v993_v49 }
 0x1a6   : > { %v840_v62 = vadd.f32 %v839_v60, %v779_v48  ;;  %v866_v2 = vmul.f32 %v1942_v59, %v1942_v59  ;;  %v859_v4 = vpop.f32.mrf.mxu3  ;;  %v955_v48 = vld [vmem:[#allocation11 + $0x28] sm:$0xff] }
 0x1a7   : > { %1073 = vmatpush.msra.mxu2 %v955_v48  ;;  %1091 = vmatpush.msra.mxu3 %v991_v61 }
 0x1a8   : > { %v1946_v8 = vmin.f32 %v866_v2, 16.0  ;;  %v1948_v9 = vadd.f32 %v859_v4, %v840_v62  ;;  %v989_v4 = vld [vmem:[#allocation11 + $0x138] sm:$0xff] }
 0x1a9   : > { %1074 = vmatpush.msra.mxu2 %v953_v56  ;;  %1092 = vmatpush.msra.mxu3 %v989_v4 }
 0x1aa   : > { %v868_v14 = vmul.f32 2.1237322e-06, %v1946_v8  ;;  %v879_v15 = vmul.f32 3.8918573e-05, %v1946_v8  ;;  %v1953_v16 = vmul.f32 0.70710677, %v1948_v9 }
 0x1ab   : > { %1075 = vmatpush.msra.mxu2 %v951_v3  ;;  %1093 = vmatpush.msra.mxu3 %v987_v10 }
 0x1ac   : > { %v869_v19 = vadd.f32 0.00028619796, %v868_v14  ;;  %v880_v20 = vadd.f32 0.001143296, %v879_v15  ;;  %v906_v22 = vmul.f32 %v1953_v16, %v1953_v16  ;;  %v985_v14 = vld [vmem:[#allocation11 + $0x118] sm:$0xff] }
 0x1ad   : > { %1094 = vmatpush.msra.mxu3 %v985_v14 }
 0x1ae   : > { %v870_v26 = vmul.f32 %v869_v19, %v1946_v8  ;;  %v881_v27 = vmul.f32 %v880_v20, %v1946_v8  ;;  %v1959_v45 = vmin.f32 %v906_v22, 16.0 }
 0x1af   : > { %1095 = vmatpush.msra.mxu3 %v983_v17 }
 0x1b0   : > { %v871_v46 = vadd.f32 0.0036580483, %v870_v26  ;;  %v882_v32 = vadd.f32 0.014752088, %v881_v27  ;;  %v908_v39 = vmul.f32 2.1237322e-06, %v1959_v45 }
 0x1b1   : > { %v919_v34 = vmul.f32 3.8918573e-05, %v1959_v45 }
 0x1b2   : > { %v883_v36 = vmul.f32 %v882_v32, %v1946_v8  ;;  %v909_v41 = vadd.f32 0.00028619796, %v908_v39  ;;  %v872_v50 = vmul.f32 %v871_v46, %v1946_v8 }
 0x1b3   : > { %v920_v42 = vadd.f32 0.001143296, %v919_v34 }
 0x1b4   : > { %v884_v47 = vadd.f32 0.112945676, %v883_v36  ;;  %v910_v51 = vmul.f32 %v909_v41, %v1959_v45  ;;  %v873_v5 = vadd.f32 0.05243302, %v872_v50 }
 0x1b5   : > { %v921_v53 = vmul.f32 %v920_v42, %v1959_v45 }
 0x1b6   : > { %v885_v60 = vmul.f32 %v884_v47, %v1946_v8  ;;  %v911_v2 = vadd.f32 0.0036580483, %v910_v51  ;;  %v874_v18 = vmul.f32 %v873_v5, %v1946_v8  ;;  %v862_v51 = vmul.f32 0.5, %v1939_v52  ;;  %v1014_v52 = vld [vmem:[%s2031_s8] sm:$0x3] }
 0x1b7   : > { %v922_v62 = vadd.f32 0.014752088, %v921_v53  ;;  %v1017_v5 = vperm.slane %v1014_v52, 1 }
 0x1b8   : > { %v886_v1 = vadd.f32 0.4994258, %v885_v60  ;;  %v912_v57 = vmul.f32 %v911_v2, %v1959_v45  ;;  %v875_v22 = vadd.f32 0.18741608, %v874_v18 }
 0x1b9   : > { %v923_v6 = vmul.f32 %v922_v62, %v1959_v45  ;;  %v863_v62 = vmul.f32 0.5, %v1948_v9 }
 0x1ba   : > { %v887_v11 = vmul.f32 %v886_v1, %v1946_v8  ;;  %v913_v21 = vadd.f32 0.05243302, %v912_v57  ;;  %v876_v27 = vmul.f32 %v875_v22, %v1946_v8 }
 0x1bb   : > { %v924_v12 = vadd.f32 0.112945676, %v923_v6 }
 0x1bc   : > { %v888_v15 = vadd.f32 1.0, %v887_v11  ;;  %v914_v26 = vmul.f32 %v913_v21, %v1959_v45  ;;  %v877_v46 = vadd.f32 1.1283791, %v876_v27 }
 0x1bd   : > { %v925_v19 = vmul.f32 %v924_v12, %v1959_v45 }
 0x1be   : > { %1401 = vrcp.f32 %v888_v15  ;;  %v900_v30 = vand.u32 2147483648, %v888_v15  ;;  %v915_v31 = vadd.f32 0.18741608, %v914_v26  ;;  %v898_v33 = vand.u32 2147483647, %v888_v15 }
 0x1bf   : > { %v926_v20 = vadd.f32 0.4994258, %v925_v19  ;;  %vm894_vm9 = vweird.f32 %v888_v15  ;;  %v878_v37 = vmul.f32 %v877_v46, %v1942_v59 }
 0x1c0   : > { %v901_v35 = vor.u32 1.1754944e-38, %v900_v30  ;;  %v916_v40 = vmul.f32 %v915_v31, %v1959_v45  ;;  %vm899_vm11 = vcmp.eq.f32.partialorder %v898_v33, 8.507059e+37 }
 0x1c1   : > { %v927_v23 = vmul.f32 %v926_v20, %v1959_v45 }
 0x1c2   : > { %v917_v44 = vadd.f32 1.1283791, %v916_v40 }
 0x1c3   : > { %v928_v24 = vadd.f32 1.0, %v927_v23 }
 0x1c4   : > { %v1402_v25 = vpop.eup %1401  ;;  %v918_v59 = vmul.f32 %v917_v44, %v1953_v16  ;;  %v1016_v16 = vperm.slane %v1014_v52, 0 }
 0x1c5   : > { %v890_v28 = vmul.f32 %v1402_v25, %v888_v15  ;;  %1403 = vrcp.f32 %v928_v24  ;;  %vm895_vm8 = vweird.f32 %v1402_v25  ;;  %v940_v43 = vand.u32 2147483648, %v928_v24 }
 0x1c6   : > { %vm896_vm10 = vmor %vm894_vm9, %vm895_vm8  ;;  %v938_v48 = vand.u32 2147483647, %v928_v24  ;;  %vm934_vm13 = vweird.f32 %v928_v24 }
 0x1c7   : > { %v891_v29 = vsub.f32 1.0, %v890_v28  ;;  %v941_v45 = vor.u32 1.1754944e-38, %v940_v43 }
 0x1c8   : > { %vm939_vm15 = vcmp.eq.f32.partialorder %v938_v48, 8.507059e+37 }
 0x1c9   : > { %v892_v32 = vmul.f32 %v1402_v25, %v891_v29 }
 0x1cb   : > { %v1404_v39 = vpop.eup %1403  ;;  %v893_v34 = vadd.f32 %v1402_v25, %v892_v32 }
 0x1cc   : > { %v930_v36 = vmul.f32 %v1404_v39, %v928_v24  ;;  %vm935_vm12 = vweird.f32 %v1404_v39 }
 0x1cd   : > { %v897_v8 = vsel %vm896_vm10, %v1402_v25, %v893_v34  ;;  %vm936_vm14 = vmor %vm934_vm13, %vm935_vm12 }
 0x1ce   : > { %v902_v38 = vsel %vm899_vm11, %v901_v35, %v897_v8  ;;  %v931_v41 = vsub.f32 1.0, %v930_v36 }
 0x1cf   : > { %v903_v42 = vmul.f32 %v902_v38, %v878_v37 }
 0x1d0   : > { %v932_v47 = vmul.f32 %v1404_v39, %v931_v41 }
 0x1d1   : > { %v1279_v49 = vclamps-f32 %v903_v42, 1.0 }
 0x1d2   : > { %v933_v50 = vadd.f32 %v1404_v39, %v932_v47 }
 0x1d3   : > { %v946_v53 = vadd.f32 1.0, %v1279_v49 }
 0x1d4   : > { %v937_v54 = vsel %vm936_vm14, %v1404_v39, %v933_v50 }
 0x1d5   : > { %v948_v55 = vmul.f32 %v946_v53, %v862_v51  ;;  %v942_v56 = vsel %vm939_vm15, %v941_v45, %v937_v54 }
 0x1d6   : > { %v943_v60 = vmul.f32 %v942_v56, %v918_v59 }
 0x1d7   : > { %1036 = vmatmul.f32.vlgmr.msra.gmra.mxu0 %v948_v55  ;;  %1076 = vmatmul.f32.vlgmr.msra.gmra.mxu2 %v948_v55 }
 0x1d8   : > { %v1280_v61 = vclamps-f32 %v943_v60, 1.0 }
 0x1da   : > { %v947_v63 = vadd.f32 1.0, %v1280_v61 }
 0x1dc   : > { %v949_v0 = vmul.f32 %v947_v63, %v863_v62 }
 0x1de   : > { %1056 = vmatmul.f32.vlgmr.msra.gmra.mxu1 %v949_v0  ;;  %1096 = vmatmul.f32.vlgmr.msra.gmra.mxu3 %v949_v0 }
 0x254   : > { %v1037_v1 = vpop.f32.mrf.mxu0 }
 0x255   : > { %v1038_v2 = vadd.f32 %v1037_v1, %v1016_v16 }
 0x25a   : > { %v1077_v9 = vpop.f32.mrf.mxu2 }
 0x25b   : > { %v1057_v3 = vpop.f32.mrf.mxu1  ;;  %v1078_v6 = vadd.f32 %v1077_v9, %v1017_v5 }
 0x25c   : > { %v1058_v4 = vadd.f32 %v1057_v3, %v1038_v2 }
 0x25e   : > { %1100 = vst [vmem:[%s467_s17] sm:$0xff] %v1058_v4 }
 0x261   : > { %v1097_v7 = vpop.f32.mrf.mxu3 }
 0x262   : > { %v1098_v10 = vadd.f32 %v1097_v7, %v1078_v6 }
 0x264   : > { %1101 = vst [vmem:[%s467_s17 + $0x8] sm:$0xff] %v1098_v10 }
 0x265   : > { %1612 = shalt.err (!%p1609_p13)
}
 0x266   : > { %1307 = dma.vmem_to_hbm [thread:$0]  (%p1833_p2), %s1119_s18, 256, %s1121_s29, %s1103_s12  }
 0x267 PF: > { %s2060_s5 = sld [smem:[#allocation20_spill]]  ;;  %p1330_p0 = pnand %p1267_p6, %p1840_p5 }
 0x269   : > { %p1331_p4 = pneg %p1330_p0 }
 0x26d   : > { %s1132_s26 = sand.u32 1, %s2060_s5  }
 0x26e   : > { %s1133_s27 = scalar_lea.sflag [#allocation4], %s1132_s26 }
 0x26f   : > { %1658 = dma.done.wait (%p1331_p4), %s1133_s27, 256  }
 0x270   : > { %1660 = vsyncadd (%p1331_p4), %s1133_s27, 4294967040  ;;  %s30_s14 = sadd.s32 1, %s1683_s14   ;;  %s2062_s20 = sld [smem:[#allocation21_spill]] }
 0x271   : > { %p27_p7 = scmp.ge.s32.totalorder %s30_s14, 4   ;;  %s2063_s11 = sld [smem:[#allocation24_spill]] }
 0x272   : > { %s2064_s23 = sld [smem:[#allocation22_spill]]  ;;  %s2065_s30 = smov %s1667_s10 }
 0x273   : > { %s2067_s12 = smov %s1679_s13 }
 0x274   :  { %29 = sbr.rel (!%p27_p7) target bundleno = 15 (0xf), region = 130 }
 0x276   : > { %s2066_s10 = smov %s2062_s20 }
 0x278   : > { %s2068_s13 = smov %s2064_s23 }
 0x279   :  { %1139 = vsyncpa [#allocation3], 1 }
 0x27a   :  { %1141 = vsyncpa [#allocation3 + $0x1], 1 }
 0x27b   :  { %1142 = vsyncpa [#allocation6], 1 }
 0x27c   :  { %1144 = vsyncpa [#allocation6 + $0x1], 1 }
 0x27d   :  { %1145 = vsyncpa [#allocation9], 1 }
 0x27e   :  { %1146 = vsyncpa [#allocation12], 1 }
 0x27f   :  { %1147 = vsyncpa [#allocation4], 1 }
 0x280   :  { %1149 = vsyncpa [#allocation4 + $0x1], 1 }

</bundles_post_ra>
